<compile_context>
chip_gen: v7x
topology: tpu7x:2x2x1
jax: 0.10.0
libtpu: 0.0.40
codegen_flags: <defaults>
</compile_context>

<pallas_src>
import numpy as np
import jax
import jax.numpy as jnp
from jax import lax
from jax.experimental import pallas as pl
from jax.experimental.pallas import tpu as pltpu


def _logit_head_kernel(scale_ref, x_ref, w_ref, b_ref, o_ref, ss_ref):
    # scale_ref: SMEM (1,)  f32    logit_scale (pre-exp)
    # x_ref:     VMEM (TB, TK)     input tile (native dtype)
    # w_ref:     VMEM (TK, TC)     head weight tile, [F, C] layout (native dtype)
    # b_ref:     VMEM (1,  TC)     head bias tile
    # o_ref:     VMEM (TB, TC) f32 output tile; doubles as the matmul accumulator
    #                              (resident across the K reduction axis)
    # ss_ref:    VMEM (TB, 1)  f32 per-row sum-of-squares accumulator
    k = pl.program_id(2)

    @pl.when(k == 0)
    def _():
        o_ref[...] = jnp.zeros_like(o_ref)
        ss_ref[...] = jnp.zeros_like(ss_ref)

    x = x_ref[...]
    # MXU matmul, f32 accumulation from native-dtype operands (no upcast),
    # accumulated directly into the resident f32 output tile.
    o_ref[...] += jnp.dot(x, w_ref[...], preferred_element_type=jnp.float32)
    # Row sum-of-squares for the normalization, accumulated in f32 (XLU reduce,
    # hidden under the MXU matmul).
    xf = x.astype(jnp.float32)
    ss_ref[...] += jnp.sum(xf * xf, axis=1, keepdims=True)

    @pl.when(k == pl.num_programs(2) - 1)
    def _():
        # F.normalize eps semantics: x / max(||x||, 1e-12)
        #                          == x * rsqrt(max(sumsq, 1e-24))
        inv_norm = lax.rsqrt(jnp.maximum(ss_ref[...], 1e-24))
        scale = jnp.exp(scale_ref[0])
        o_ref[...] = (o_ref[...] * inv_norm + b_ref[...].astype(jnp.float32)) * scale


def _round_up(v, m):
    return ((v + m - 1) // m) * m


def logit_head(x, weight_fc, bias, logit_scale, *, tb=256, tc=512, tk=512):
    """LogitHead forward.

    x:         [B, F]  activations (f32 or bf16)
    weight_fc: [F, C]  head weight, already transposed from PyTorch's [C, F]
                       (transpose once at parameter-init time, not per call)
    bias:      [C]     head bias
    logit_scale: scalar (pre-exp)
    returns    [B, C]  f32 logits
    """
    B, F = x.shape
    Fw, C = weight_fc.shape
    assert Fw == F, "weight must be in [F, C] layout"

    # Lane/sublane-aligned tiles, clamped to the (padded) problem size.
    TB = min(tb, _round_up(B, 8))
    TC = min(tc, _round_up(C, 128))
    TK = min(tk, _round_up(F, 128))
    Bp, Cp, Fp = _round_up(B, TB), _round_up(C, TC), _round_up(F, TK)

    # Zero-padding keeps both the matmul and the sum-of-squares exact.
    x_p = x if (Bp, Fp) == (B, F) else jnp.pad(x, ((0, Bp - B), (0, Fp - F)))
    w_p = (weight_fc if (Fp, Cp) == (F, C)
           else jnp.pad(weight_fc, ((0, Fp - F), (0, Cp - C))))
    b_p = (bias if Cp == C else jnp.pad(bias, (0, Cp - C))).reshape(1, Cp)
    scale = jnp.asarray([logit_scale], dtype=jnp.float32)

    grid = (Bp // TB, Cp // TC, Fp // TK)

    # Double-buffered inputs + double-buffered f32 output (also the accumulator)
    # + sum-of-squares scratch, with headroom (sized for v7x's 64 MiB physical
    # VMEM as well).
    vmem_bytes = int(
        2 * (TB * TK * x_p.dtype.itemsize
             + TK * TC * w_p.dtype.itemsize
             + TC * b_p.dtype.itemsize)
        + 2 * TB * TC * 4            # double-buffered f32 output / accumulator
        + TB * 128 * 4)              # sum-of-squares scratch (lane-padded)
    vmem_limit = min(96 * 1024 * 1024, max(32 * 1024 * 1024, 2 * vmem_bytes))

    cost = pl.CostEstimate(
        flops=2 * Bp * Cp * Fp + 3 * Bp * Fp,
        transcendentals=Bp,
        bytes_accessed=(Bp * Fp * x_p.dtype.itemsize
                        + Fp * Cp * w_p.dtype.itemsize
                        + Cp * b_p.dtype.itemsize
                        + Bp * Cp * 4),
    )

    out_p = pl.pallas_call(
        _logit_head_kernel,
        out_shape=jax.ShapeDtypeStruct((Bp, Cp), jnp.float32),
        grid_spec=pltpu.PrefetchScalarGridSpec(
            num_scalar_prefetch=0,
            grid=grid,
            in_specs=[
                pl.BlockSpec(memory_space=pltpu.SMEM),                # logit_scale
                pl.BlockSpec((TB, TK), lambda i, j, k: (i, k)),       # x tile
                pl.BlockSpec((TK, TC), lambda i, j, k: (k, j)),       # W [F,C] tile
                pl.BlockSpec((1, TC), lambda i, j, k: (0, j)),        # bias tile
            ],
            out_specs=pl.BlockSpec((TB, TC), lambda i, j, k: (i, j)),
            scratch_shapes=[
                pltpu.VMEM((TB, 1), jnp.float32),    # row sum-of-squares
            ],
        ),
        compiler_params=pltpu.CompilerParams(
            dimension_semantics=("parallel", "parallel", "arbitrary"),
            vmem_limit_bytes=vmem_limit,
        ),
        cost_estimate=cost,
    )(scale, x_p, w_p, b_p)

    return out_p[:B, :C]


def _reference(x, weight_cf, bias, logit_scale):
    # Pure-JAX reference mirroring the PyTorch forward (weight in [C, F] layout).
    norm = jnp.sqrt(jnp.sum(x * x, axis=1, keepdims=True))
    xn = x / jnp.maximum(norm, 1e-12)
    y = xn @ weight_cf.T + bias
    return y * jnp.exp(logit_scale)


if __name__ == "__main__":
    # Small shapes consistent with the module: head = nn.Linear(F, C).
    B, F, C = 8, 32, 16
    logit_scale = float(np.log(1.0 / 0.07))

    key = jax.random.PRNGKey(0)
    kx, kw, kb = jax.random.split(key, 3)
    x = jax.random.normal(kx, (B, F), dtype=jnp.float32)
    # PyTorch Linear layout: weight [C, F], bias [C].
    weight_cf = jax.random.normal(kw, (C, F), dtype=jnp.float32) * (1.0 / np.sqrt(F))
    bias = jax.random.normal(kb, (C,), dtype=jnp.float32) * 0.01

    # One-time parameter-layout prep ([C, F] -> [F, C]); not paid per call.
    weight_fc = jnp.asarray(weight_cf.T)

    out = logit_head(x, weight_fc, bias, logit_scale)
    out = jax.block_until_ready(out)

    ref = _reference(x, weight_cf, bias, logit_scale)
    np.testing.assert_allclose(np.asarray(out), np.asarray(ref), rtol=1e-5, atol=1e-5)

    print("KERNEL_OK")
</pallas_src>

<mosaic_0001>
module attributes {stable_mosaic.version = 11 : i64} {
  func.func @_logit_head_kernel(%arg0: i32, %arg1: i32, %arg2: i32, %arg3: memref<1xf32, #tpu.memory_space<smem>>, %arg4: memref<8x128xf32, #tpu.memory_space<vmem>>, %arg5: memref<128x128xf32, #tpu.memory_space<vmem>>, %arg6: memref<1x128xf32, #tpu.memory_space<vmem>>, %arg7: memref<8x128xf32, #tpu.memory_space<vmem>>, %arg8: memref<8x1xf32, #tpu.memory_space<vmem>>) attributes {dimension_semantics = [#tpu.dimension_semantics<parallel>, #tpu.dimension_semantics<parallel>, #tpu.dimension_semantics<arbitrary>], iteration_bounds = array<i64: 1, 1, 1>, scalar_prefetch = 0 : i64, scratch_operands = 1 : i64, tpu.core_type = #tpu.core_type<tc>, window_params = [{transform_indices = @transform_0, window_bounds = array<i64: 1>}, {transform_indices = @transform_1, window_bounds = array<i64: 8, 128>}, {transform_indices = @transform_2, window_bounds = array<i64: 128, 128>}, {transform_indices = @transform_3, window_bounds = array<i64: 1, 128>}, {transform_indices = @transform_4, window_bounds = array<i64: 8, 128>}]} {
    %c0_i32 = arith.constant 0 : i32
    %0 = arith.cmpi eq, %arg2, %c0_i32 : i32
    %1 = arith.extui %0 : i1 to i32
    %c0_i32_0 = arith.constant 0 : i32
    %2 = arith.cmpi ne, %1, %c0_i32_0 : i32
    scf.if %2 {
      %cst_15 = arith.constant 0.000000e+00 : f32
      %18 = vector.broadcast %cst_15 : f32 to vector<8x128xf32>
      %c0_16 = arith.constant 0 : index
      %c0_17 = arith.constant 0 : index
      %19 = vector.load %arg7[%c0_16, %c0_17] : memref<8x128xf32, #tpu.memory_space<vmem>>, vector<8x128xf32>
      tpu.vector_store %arg7[%c0_16, %c0_17], %18 {strides = array<i32>} : memref<8x128xf32, #tpu.memory_space<vmem>>, vector<8x128xf32>,
      %cst_18 = arith.constant 0.000000e+00 : f32
      %20 = vector.broadcast %cst_18 : f32 to vector<8x1xf32>
      %c0_19 = arith.constant 0 : index
      %c0_20 = arith.constant 0 : index
      %21 = vector.load %arg8[%c0_19, %c0_20] : memref<8x1xf32, #tpu.memory_space<vmem>>, vector<8x1xf32>
      tpu.vector_store %arg8[%c0_19, %c0_20], %20 {strides = array<i32>} : memref<8x1xf32, #tpu.memory_space<vmem>>, vector<8x1xf32>,
    } else {
    }
    %c0 = arith.constant 0 : index
    %c0_1 = arith.constant 0 : index
    %3 = vector.load %arg4[%c0, %c0_1] : memref<8x128xf32, #tpu.memory_space<vmem>>, vector<8x128xf32>
    %c0_2 = arith.constant 0 : index
    %c0_3 = arith.constant 0 : index
    %4 = vector.load %arg7[%c0_2, %c0_3] : memref<8x128xf32, #tpu.memory_space<vmem>>, vector<8x128xf32>
    %c0_4 = arith.constant 0 : index
    %c0_5 = arith.constant 0 : index
    %5 = vector.load %arg5[%c0_4, %c0_5] : memref<128x128xf32, #tpu.memory_space<vmem>>, vector<128x128xf32>
    %cst = arith.constant dense<0.000000e+00> : vector<8x128xf32>
    %6 = tpu.matmul %3, %5, %cst {dimension_numbers = #tpu.dot_dimension_numbers<[1], [0], [0], [1], [0, 0, 1, 1], [], []>} : vector<8x128xf32>, vector<128x128xf32>, vector<8x128xf32> -> vector<8x128xf32>
    %7 = arith.addf %4, %6 : vector<8x128xf32>
    %c0_6 = arith.constant 0 : index
    %c0_7 = arith.constant 0 : index
    %8 = vector.load %arg7[%c0_6, %c0_7] : memref<8x128xf32, #tpu.memory_space<vmem>>, vector<8x128xf32>
    tpu.vector_store %arg7[%c0_6, %c0_7], %7 {strides = array<i32>} : memref<8x128xf32, #tpu.memory_space<vmem>>, vector<8x128xf32>,
    %c0_8 = arith.constant 0 : index
    %c0_9 = arith.constant 0 : index
    %9 = vector.load %arg8[%c0_8, %c0_9] : memref<8x1xf32, #tpu.memory_space<vmem>>, vector<8x1xf32>
    %10 = arith.mulf %3, %3 : vector<8x128xf32>
    %cst_10 = arith.constant dense<0.000000e+00> : vector<8xf32>
    %11 = vector.multi_reduction <add>, %10, %cst_10 [1] : vector<8x128xf32> to vector<8xf32>
    %12 = vector.shape_cast %11 : vector<8xf32> to vector<8x1xf32>
    %13 = arith.addf %9, %12 : vector<8x1xf32>
    %c0_11 = arith.constant 0 : index
    %c0_12 = arith.constant 0 : index
    %14 = vector.load %arg8[%c0_11, %c0_12] : memref<8x1xf32, #tpu.memory_space<vmem>>, vector<8x1xf32>
    tpu.vector_store %arg8[%c0_11, %c0_12], %13 {strides = array<i32>} : memref<8x1xf32, #tpu.memory_space<vmem>>, vector<8x1xf32>,
    %c0_i32_13 = arith.constant 0 : i32
    %15 = arith.cmpi eq, %arg2, %c0_i32_13 : i32
    %16 = arith.extui %15 : i1 to i32
    %c0_i32_14 = arith.constant 0 : i32
    %17 = arith.cmpi ne, %16, %c0_i32_14 : i32
    scf.if %17 {
      %c0_15 = arith.constant 0 : index
      %c0_16 = arith.constant 0 : index
      %18 = vector.load %arg8[%c0_15, %c0_16] : memref<8x1xf32, #tpu.memory_space<vmem>>, vector<8x1xf32>
      %cst_17 = arith.constant 1.000000e-24 : f32
      %19 = vector.broadcast %cst_17 : f32 to vector<8x1xf32>
      %20 = arith.maximumf %18, %19 : vector<8x1xf32>
      %21 = math.rsqrt %20 : vector<8x1xf32>
      %c0_18 = arith.constant 0 : index
      %22 = memref.load %arg3[%c0_18] : memref<1xf32, #tpu.memory_space<smem>>
      %23 = math.exp %22 : f32
      %c0_19 = arith.constant 0 : index
      %c0_20 = arith.constant 0 : index
      %24 = vector.load %arg7[%c0_19, %c0_20] : memref<8x128xf32, #tpu.memory_space<vmem>>, vector<8x128xf32>
      %25 = vector.broadcast %21 : vector<8x1xf32> to vector<8x128xf32>
      %26 = arith.mulf %24, %25 : vector<8x128xf32>
      %c0_21 = arith.constant 0 : index
      %c0_22 = arith.constant 0 : index
      %27 = vector.load %arg6[%c0_21, %c0_22] : memref<1x128xf32, #tpu.memory_space<vmem>>, vector<1x128xf32>
      %28 = vector.broadcast %27 : vector<1x128xf32> to vector<8x128xf32>
      %29 = arith.addf %26, %28 : vector<8x128xf32>
      %30 = vector.broadcast %23 : f32 to vector<8x128xf32>
      %31 = arith.mulf %29, %30 : vector<8x128xf32>
      %c0_23 = arith.constant 0 : index
      %c0_24 = arith.constant 0 : index
      %32 = vector.load %arg7[%c0_23, %c0_24] : memref<8x128xf32, #tpu.memory_space<vmem>>, vector<8x128xf32>
      tpu.vector_store %arg7[%c0_23, %c0_24], %31 {strides = array<i32>} : memref<8x128xf32, #tpu.memory_space<vmem>>, vector<8x128xf32>,
    } else {
    }
    return
  }
  func.func @transform_0(%arg0: i32, %arg1: i32, %arg2: i32) -> i32 {
    %c0_i32 = arith.constant 0 : i32
    %c0_i32_0 = arith.constant 0 : i32
    return %c0_i32 : i32
  }
  func.func @transform_1(%arg0: i32, %arg1: i32, %arg2: i32) -> (i32, i32) {
    %c0_i32 = arith.constant 0 : i32
    return %arg0, %arg2 : i32, i32
  }
  func.func @transform_2(%arg0: i32, %arg1: i32, %arg2: i32) -> (i32, i32) {
    %c0_i32 = arith.constant 0 : i32
    return %arg2, %arg1 : i32, i32
  }
  func.func @transform_3(%arg0: i32, %arg1: i32, %arg2: i32) -> (i32, i32) {
    %c0_i32 = arith.constant 0 : i32
    %c0_i32_0 = arith.constant 0 : i32
    return %c0_i32, %arg1 : i32, i32
  }
  func.func @transform_4(%arg0: i32, %arg1: i32, %arg2: i32) -> (i32, i32) {
    %c0_i32 = arith.constant 0 : i32
    return %arg0, %arg1 : i32, i32
  }
}

</mosaic_0001>

<bundles_post_ra>
// kernel: tpu_custom_call.1
= control target key start
LH: loop header
LB: loop body
LE: loop exit
PB: predicated region body
PF: predicated region fallthrough
CT: control target
= control target key end

     0   :  { %10 = vsyncpa [#allocation5], 0  ;;  %s444_s0 = inlined_call_operand.<no memory space> [shape: f32[1], index: 0, kind: input, shape index: {}]   ;;  %s445_s1 = inlined_call_operand.hbm [shape: f32[8,128], index: 1, kind: input, shape index: {}]   ;;  %s446_s2 = inlined_call_operand.hbm [shape: f32[128,128], index: 2, kind: input, shape index: {}]   ;;  %s447_s3 = inlined_call_operand.vmem [shape: f32[1,128], index: 3, kind: input, shape index: {}]   ;;  %s448_s4 = inlined_call_operand.hbm [shape: f32[8,128], index: 4, kind: output, shape index: {}]  }
   0x1   :  { %11 = vsyncpa [#allocation8], 0 }
   0x2   :  { %12 = vsyncpa [#allocation6], 0  ;;  %s359_s15 = smov [#allocation4]   ;;  %s360_s17 = smov [#allocation7]  }
   0x3   :  { %s21_s16 = sshll.u32 %s359_s15, 4  ;;  %s30_s18 = sshll.u32 %s360_s17, 4  ;;  %s22_s16 = int_to_ptr.vmem [resolvable:$true] %s21_s16  ;;  %s393_s18 = int_to_ptr.vmem [resolvable:$true] %s30_s18 }
   0x4   :  { %s287_s21 = scalar_lea.hbm %s445_s1, 128 }
   0x5   :  { %p288_p0 = scmp.ne.s32.totalorder %s445_s1, %s287_s21  ;;  %p291_p1 = scmp.lt.u32.totalorder %s287_s21, %s445_s1 }
   0x7   :  { %p293_p2 = pnand %p291_p1, %p288_p0 }
   0x9   :  { %296 = shalt.err (!%p293_p2)
}
   0xa   :  { %s297_s26 = scalar_lea.vmem %s22_s16, 128  ;;  %p302_p4 = scmp.lt.s32.totalorder %s22_s16, %s22_s16 }
   0xb   :  { %p298_p3 = scmp.ne.s32.totalorder %s22_s16, %s297_s26  ;;  %p303_p5 = scmp.lt.s32.totalorder %s297_s26, %s297_s26 }
   0xd   :  { %p304_p6 = por %p303_p5, %p302_p4 }
   0xf   :  { %p305_p7 = pnand %p304_p6, %p298_p3 }
  0x11   :  { %308 = shalt.err (!%p305_p7)
}
  0x12   :  { %24 = dma.hbm_to_vmem [thread:$0]  %s445_s1, 128, %s22_s16, [#allocation5]  }
  0x13   :  { %s309_s5 = scalar_lea.hbm %s446_s2, 2048 }
  0x14   :  { %p310_p8 = scmp.ne.s32.totalorder %s446_s2, %s309_s5  ;;  %p313_p9 = scmp.lt.u32.totalorder %s309_s5, %s446_s2 }
  0x16   :  { %p315_p10 = pnand %p313_p9, %p310_p8 }
  0x18   :  { %318 = shalt.err (!%p315_p10)
}
  0x19   :  { %s319_s10 = scalar_lea.vmem %s393_s18, 2048  ;;  %p324_p12 = scmp.lt.s32.totalorder %s393_s18, %s393_s18 }
  0x1a   :  { %p320_p11 = scmp.ne.s32.totalorder %s393_s18, %s319_s10  ;;  %p325_p13 = scmp.lt.s32.totalorder %s319_s10, %s319_s10 }
  0x1c   :  { %p326_p0 = por %p325_p13, %p324_p12 }
  0x1e   :  { %p327_p1 = pnand %p326_p0, %p320_p11 }
  0x20   :  { %330 = shalt.err (!%p327_p1)
}
  0x21   :  { %s361_s1 = smov 128   ;;  %s362_s11 = smov 8  }
  0x22   :  { %36 = dma.hbm_to_vmem [thread:$0]  %s446_s2, 2048, %s393_s18, [#allocation8], %s361_s1, %s361_s1, %s362_s11  }
  0x23   :  { %353 = dma.done.wait [#allocation5], 128  }
  0x24   :  { %354 = vsyncadd [#allocation5], 4294967168 }
  0x25   :  { %355 = dma.done.wait [#allocation8], 2048  }
  0x26   :  { %356 = vsyncadd [#allocation8], 4294965248  ;;  %vm50_vm0 = vcmask 7168   ;;  %v363_v0 = vmov 0.0|0.0   ;;  %v364_v1 = vmov 0.0   ;;  %vm365_vm1 = vmmov 0  }
  0x27   :  { %247 = vmatprep.subr.bf16.mxu0 %v363_v0  ;;  %51 = vst.msk [vmem:[#allocation2] sm:$0xff] %vm50_vm0, %v364_v1  ;;  %244 = vmatprep.mubr.msk.f32.mxu0 %vm365_vm1, %v364_v1  ;;  %v52_v2 = vld [vmem:[#allocation4] sm:$0xff]  ;;  %v54_v3 = vld [vmem:[#allocation7] sm:$0xff]  ;;  %v55_v4 = vld [vmem:[#allocation7 + $0x8] sm:$0xff]  ;;  %v366_v24 = vmov 0   ;;  %v156_v29 = vstv %s444_s0  ;;  %s367_s0 = smov [#allocation9]  }
  0x28   :  { %v143_v5 = vmul.f32 %v52_v2, %v52_v2  ;;  %v248_v6 = vpack.c.bf16 %v55_v4, %v54_v3  ;;  %v56_v7 = vld [vmem:[#allocation7 + $0x10] sm:$0xff]  ;;  %v57_v8 = vld [vmem:[#allocation7 + $0x18] sm:$0xff]  ;;  %v58_v10 = vld [vmem:[#allocation7 + $0x20] sm:$0xff]  ;;  %282 = vset.pattern.permute.xlu0 %v366_v24  ;;  %v157_v30 = vmul.f32 1.442695, %v156_v29  ;;  %s184_s18 = sshll.u32 %s367_s0, 4  ;;  %s185_s18 = int_to_ptr.vmem [resolvable:$true] %s184_s18 }
  0x29   :  { %v251_v9 = vpack.c.bf16 %v57_v8, %v56_v7  ;;  %v59_v11 = vld [vmem:[#allocation7 + $0x28] sm:$0xff]  ;;  %v60_v13 = vld [vmem:[#allocation7 + $0x30] sm:$0xff]  ;;  %v61_v14 = vld [vmem:[#allocation7 + $0x38] sm:$0xff]  ;;  %s331_s19 = scalar_lea.vmem %s185_s18, 128  ;;  %p336_p3 = scmp.lt.s32.totalorder %s185_s18, %s185_s18 }
  0x2a   :  { %144 = vadd.xlane.f32.xlu0 %v143_v5  ;;  %249 = vmatpush3.bf16.msra.mxu0 %v248_v6  ;;  %v254_v12 = vpack.c.bf16 %v59_v11, %v58_v10  ;;  %v257_v15 = vpack.c.bf16 %v61_v14, %v60_v13  ;;  %v62_v16 = vld [vmem:[#allocation7 + $0x40] sm:$0xff]  ;;  %v63_v17 = vld [vmem:[#allocation7 + $0x48] sm:$0xff]  ;;  %v64_v19 = vld [vmem:[#allocation7 + $0x50] sm:$0xff]  ;;  %283 = vpow2.f32 %v157_v30  ;;  %p332_p2 = scmp.ne.s32.totalorder %s185_s18, %s331_s19  ;;  %p337_p4 = scmp.lt.s32.totalorder %s331_s19, %s331_s19 }
  0x2b   :  { %250 = vmatprep.subr.bf16.mxu0 %v363_v0  ;;  %v260_v18 = vpack.c.bf16 %v63_v17, %v62_v16  ;;  %v65_v20 = vld [vmem:[#allocation7 + $0x58] sm:$0xff]  ;;  %v66_v22 = vld [vmem:[#allocation7 + $0x60] sm:$0xff]  ;;  %v67_v23 = vld [vmem:[#allocation7 + $0x68] sm:$0xff] }
  0x2c   :  { %v263_v21 = vpack.c.bf16 %v65_v20, %v64_v19  ;;  %v266_v25 = vpack.c.bf16 %v67_v23, %v66_v22  ;;  %v68_v26 = vld [vmem:[#allocation7 + $0x70] sm:$0xff]  ;;  %v69_v27 = vld [vmem:[#allocation7 + $0x78] sm:$0xff]  ;;  %p338_p5 = por %p337_p4, %p336_p3 }
  0x2d   :  { %v269_v28 = vpack.c.bf16 %v69_v27, %v68_v26  ;;  %v194_v40 = vld [vmem:[%s447_s3] ss:$0 sm:$0xff] }
  0x2e   :  { %252 = vmatpush3.bf16.msra.mxu0 %v251_v9  ;;  %v142_v32 = vld [vmem:[#allocation2] sm:$0xff]  ;;  %p339_p6 = pnand %p338_p5, %p332_p2 }
  0x2f   :  { %253 = vmatprep.subr.bf16.mxu0 %v363_v0 }
  0x32   :  { %255 = vmatpush3.bf16.msra.mxu0 %v254_v12 }
  0x33   :  { %256 = vmatprep.subr.bf16.mxu0 %v363_v0 }
  0x34   :  { %v284_v31 = vpop.eup %283 }
  0x35   :  { %271 = vpush %v284_v31 }
  0x36   :  { %258 = vmatpush3.bf16.msra.mxu0 %v257_v15 }
  0x37   :  { %259 = vmatprep.subr.bf16.mxu0 %v363_v0 }
  0x3a   :  { %261 = vmatpush3.bf16.msra.mxu0 %v260_v18 }
  0x3b   :  { %262 = vmatprep.subr.bf16.mxu0 %v363_v0 }
  0x3e   :  { %264 = vmatpush3.bf16.msra.mxu0 %v263_v21 }
  0x3f   :  { %265 = vmatprep.subr.bf16.mxu0 %v363_v0 }
  0x42   :  { %267 = vmatpush3.bf16.msra.mxu0 %v266_v25 }
  0x43   :  { %268 = vmatprep.subr.bf16.mxu0 %v363_v0 }
  0x46   :  { %270 = vmatpush3.bf16.msra.mxu0 %v269_v28 }
  0x49   :  { %245 = vmatmul.mubr.f32.vlgmr.msra.gmra.mrb[0].mxu0 %v52_v2 }
  0x66   :  { %s272_s15 = spop %271 }
  0x67   :  { %v175_v43 = vstv %s272_s15 }
  0xb7   :  { %v145_v33 = vpop.xlane.xlu0 %144 }
  0xb8   :  { %v146_v34 = vadd.f32 %v145_v33, %v142_v32 }
  0xba   :  { %148 = vst.msk [vmem:[#allocation2] sm:$0xff] %vm50_vm0, %v146_v34 }
  0xc1   :  { %v152_v35 = vld [vmem:[#allocation2] sm:$0xff] }
  0xc2   :  { %v153_v36 = vmax.f32 %v152_v35, 1e-24 }
  0xc4   :  { %285 = vrsqrt.f32 %v153_v36 }
  0xce   :  { %v286_v37 = vpop.eup %285 }
  0xcf   :  { %163 = vperm.xlu0 %282, %v286_v37  }
 0x11c   :  { %v136_v38 = vpop.f32.mrb[0].mxu0 }
 0x11d   :  { %v246_v39 = vpop.f32.mrb[1].mxu0 }
 0x14e   :  { %v164_v41 = vpop.permute.xlu0 %163 }
 0x14f   :  { %v166_v42 = vmul.f32 %v164_v41, %v136_v38 }
 0x151   :  { %v174_v44 = vadd.f32 %v194_v40, %v166_v42 }
 0x153   :  { %v176_v45 = vmul.f32 %v175_v43, %v174_v44 }
 0x155   :  { %177 = vst [vmem:[#allocation9] sm:$0xff] %v176_v45 }
 0x156   :  { %342 = shalt.err (!%p339_p6)
}
 0x157   :  { %s343_s3 = scalar_lea.hbm %s448_s4, 128 }
 0x158   :  { %p344_p7 = scmp.ne.s32.totalorder %s448_s4, %s343_s3  ;;  %p347_p8 = scmp.lt.u32.totalorder %s343_s3, %s448_s4 }
 0x15a   :  { %p349_p9 = pnand %p347_p8, %p344_p7 }
 0x15c   :  { %352 = shalt.err (!%p349_p9)
}
 0x15d   :  { %187 = dma.vmem_to_hbm [thread:$0]  %s185_s18, 128, %s448_s4, [#allocation6]  }
 0x15e   :  { %357 = dma.done.wait [#allocation6], 128  }
 0x15f   :  { %358 = vsyncadd [#allocation6], 4294967168 }
 0x160   :  { %191 = vsyncpa [#allocation5], 1 }
 0x161   :  { %192 = vsyncpa [#allocation8], 1 }
 0x162   :  { %193 = vsyncpa [#allocation6], 1 }

</bundles_post_ra>
